<compile_context>
chip_gen: v6e
topology: v6e:2x2x1
jax: 0.10.0
libtpu: 0.0.40
codegen_flags: <defaults>
</compile_context>

<pallas_src>
import functools
import math

import numpy as np
import jax
import jax.numpy as jnp
from jax.experimental import pallas as pl
from jax.experimental.pallas import tpu as pltpu


PARAM_ORDER = (
    "sqrt_beta", "ln1_g", "ln1_b",
    "wqkv", "bqkv", "wo", "bo", "ln2_g", "ln2_b",
    "w1", "b1", "w2", "b2", "ln3_g", "ln3_b",
)


# ----------------------------------------------------------------------------
# In-kernel helpers (pure jnp, traced inside the Pallas kernel body)
# ----------------------------------------------------------------------------
def _layer_norm(x, g, b, eps=1e-12):
    u = jnp.mean(x, axis=-1, keepdims=True)
    d = x - u
    v = jnp.mean(d * d, axis=-1, keepdims=True)
    return g * d * jax.lax.rsqrt(v + eps) + b


def _gelu_tanh(x):
    # tanh-based GELU (|err| vs exact erf GELU < ~1e-3); tanh runs on the EUP slot.
    c = 0.7978845608028654  # sqrt(2/pi)
    return 0.5 * x * (1.0 + jnp.tanh(c * (x + 0.044715 * x * x * x)))


# ----------------------------------------------------------------------------
# Fused kernel: one grid step = one BSARecBlock on a (Bt, S, H) batch tile.
# grid = (num_batch_tiles, num_layers); out_ref is the resident activation.
# ----------------------------------------------------------------------------
def bsarec_fused_kernel(x_ref, mask_ref, filt_ref,
                        sb_ref, ln1g_ref, ln1b_ref,
                        wqkv_ref, bqkv_ref, wo_ref, bo_ref, ln2g_ref, ln2b_ref,
                        w1_ref, b1_ref, w2_ref, b2_ref, ln3g_ref, ln3b_ref,
                        out_ref, ctx_scr, *, alpha, num_heads):
    l = pl.program_id(1)

    # Resident activation: read the HBM input tile only at layer 0, otherwise the
    # previous layer's output.  jnp.where is a pure select, so the (uninitialized)
    # out_ref read at l == 0 is masked out; no layer-0 store+reload round trip.
    x3 = jnp.where(l == 0, x_ref[...], out_ref[...])     # (Bt, S, H) f32

    Bt, S, H = x3.shape
    M = Bt * S
    hd = H // num_heads
    inv_sqrt_hd = 1.0 / math.sqrt(hd)

    x2 = x3.reshape(M, H)                 # fold batch into the MXU M dimension
    x2_bf = x2.astype(jnp.bfloat16)

    # ---- FrequencyLayer (DSP branch): rfft low-pass == (S,S) projection -------
    # filt_ref is the host-pre-broadcast (Bt,S,S) projection, VMEM-resident for
    # the whole call (no in-kernel broadcast_to).  Kept f32 on purpose: `high =
    # x - low` is amplified by sqrt_beta**2 (accuracy); it is the only f32 matmul.
    low = jnp.einsum("bsk,bkh->bsh", filt_ref[...], x3,
                     preferred_element_type=jnp.float32).reshape(M, H)
    high = x2 - low
    sb = sb_ref[...]                      # (1, H)
    emb = low + (sb * sb) * high
    dsp = _layer_norm(emb + x2, ln1g_ref[...], ln1b_ref[...])

    # ---- MultiHeadAttention (GSP branch) --------------------------------------
    qkv = (jnp.dot(x2_bf, wqkv_ref[...], preferred_element_type=jnp.float32)
           + bqkv_ref[...])               # (M, 3H) f32
    qkv_bf = qkv.astype(jnp.bfloat16)     # single bf16 cast for q, k and v

    def split_heads(base):
        # (M, H) columns -> (num_heads*Bt, S, hd): heads folded into the leading
        # batch axis (static lane slices + a leading-axis concat), so QK^T and
        # P.V each run as ONE batched einsum instead of an unrolled head loop.
        parts = [qkv_bf[:, base + h * hd: base + (h + 1) * hd].reshape(Bt, S, hd)
                 for h in range(num_heads)]
        return parts[0] if num_heads == 1 else jnp.concatenate(parts, axis=0)

    qh = split_heads(0)
    kh = split_heads(H)
    vh = split_heads(2 * H)

    scores = jnp.einsum("gqd,gkd->gqk", qh, kh,
                        preferred_element_type=jnp.float32)
    scores = scores * inv_sqrt_hd + mask_ref[...]   # shared (S,S) mask broadcasts
    m = jnp.max(scores, axis=-1, keepdims=True)
    p = jnp.exp(scores - m)
    probs = p * pl.reciprocal(jnp.sum(p, axis=-1, keepdims=True), approx=True)
    ctx = jnp.einsum("gqk,gkd->gqd", probs.astype(jnp.bfloat16), vh,
                     preferred_element_type=jnp.float32)   # (nh*Bt, S, hd) f32

    # Merge heads into the (M, H) bf16 scratch via static column-slice stores,
    # then apply Wo as ONE K=H matmul (replaces num_heads K=hd partial matmuls).
    for h in range(num_heads):
        ctx_scr[:, h * hd:(h + 1) * hd] = (
            ctx[h * Bt:(h + 1) * Bt].reshape(M, hd).astype(jnp.bfloat16))
    attn = (jnp.dot(ctx_scr[...], wo_ref[...], preferred_element_type=jnp.float32)
            + bo_ref[...])
    gsp = _layer_norm(attn + x2, ln2g_ref[...], ln2b_ref[...])

    # ---- BSARecLayer mix -------------------------------------------------------
    hidden = alpha * dsp + (1.0 - alpha) * gsp

    # ---- FeedForward -----------------------------------------------------------
    inter = _gelu_tanh(jnp.dot(hidden.astype(jnp.bfloat16), w1_ref[...],
                               preferred_element_type=jnp.float32) + b1_ref[...])
    ff = jnp.dot(inter.astype(jnp.bfloat16), w2_ref[...],
                 preferred_element_type=jnp.float32) + b2_ref[...]
    out2 = _layer_norm(ff + hidden, ln3g_ref[...], ln3b_ref[...])

    out_ref[...] = out2.reshape(Bt, S, H).astype(out_ref.dtype)


# ----------------------------------------------------------------------------
# Per-generation sizing helpers
# ----------------------------------------------------------------------------
def _tpu_vmem_capacity_bytes():
    try:
        return int(pltpu.get_tpu_info().vmem_capacity_bytes)
    except Exception:
        return 64 * 1024 * 1024          # conservative fallback (v7x per-TC VMEM)


def _vmem_estimate_bytes(bt, S, H, num_heads, per_layer_w_bytes):
    """Rough per-step VMEM footprint: residents + double-buffered streams +
    transient intermediates.  Intentionally conservative."""
    M = bt * S
    d_ff = 4 * H
    est = 0
    est += 2 * 2 * bt * S * H * 4                 # x tile + resident activation (2-buf)
    est += 2 * (bt * S * S * 4 + S * S * 4)       # resident filter + mask
    est += 2 * per_layer_w_bytes                  # double-buffered per-layer weights
    est += M * H * 2                              # bf16 ctx scratch
    est += M * (3 * H * 6 + d_ff * 6 + 8 * H)     # qkv / heads / ffn transients
    est += num_heads * bt * S * S * 10            # scores + probs transients
    return est


def _pick_batch_tile(B, S, H, num_heads, per_layer_w_bytes, vmem_budget):
    bt = max(1, min(B, max(1, 256 // S)))         # fill the 256-wide MXU M dim
    if B > 1:
        bt = min(bt, max(1, B // 2))              # >=2 batch tiles for v7x's 2 TCs
    while B % bt:
        bt -= 1
    while bt > 1 and _vmem_estimate_bytes(bt, S, H, num_heads,
                                          per_layer_w_bytes) > vmem_budget:
        bt -= 1
        while B % bt:
            bt -= 1
    return bt


# ----------------------------------------------------------------------------
# Wrapper: one pallas_call runs the whole layer stack.
# ----------------------------------------------------------------------------
def bsarec_forward(x, mask, filt, params, *, alpha, num_heads, batch_tile=None):
    """x: (B,S,H) f32; mask: (S,S) f32 shared additive mask; filt: (S,S) f32
    low-pass projection; params: dict of per-layer-stacked weights (leading dim
    = num_layers)."""
    B, S, H = x.shape
    L = params["wqkv"].shape[0]

    per_layer_w_bytes = sum(int(params[k].nbytes) // L for k in PARAM_ORDER)
    vmem_cap = _tpu_vmem_capacity_bytes()
    vmem_limit = min(int(vmem_cap * 0.85), 112 * 1024 * 1024)

    if batch_tile is None:
        batch_tile = _pick_batch_tile(B, S, H, num_heads, per_layer_w_bytes,
                                      int(vmem_limit * 0.7))
    batch_tile = max(1, min(batch_tile, B))
    while B % batch_tile:
        batch_tile -= 1
    nb = B // batch_tile

    # Host-side one-off prep: shared (S,S) additive mask (resident) and the
    # low-pass projection pre-broadcast over the batch tile (resident, DMA'd
    # once; removes the per-layer in-kernel broadcast_to).
    mask2 = mask.astype(jnp.float32)
    assert mask2.shape == (S, S), "fused path expects a shared (S,S) additive mask"
    # TODO(synk): per-example padding masks would need a (batch_tile,S,S) block.
    filt_b = jnp.broadcast_to(filt.astype(jnp.float32)[None], (batch_tile, S, S))

    kernel = functools.partial(bsarec_fused_kernel, alpha=alpha,
                               num_heads=num_heads)

    def layer_spec(arr):
        # TODO(synk): add pipeline_mode=pl.Buffered(3) here if profiling shows
        # exposed per-layer weight DMA for small H/S.
        d1, d2 = arr.shape[1], arr.shape[2]
        return pl.BlockSpec((None, d1, d2), lambda b, l: (l, 0, 0))

    in_specs = [
        pl.BlockSpec((batch_tile, S, H), lambda b, l: (b, 0, 0)),   # x (per tile)
        pl.BlockSpec((S, S), lambda b, l: (0, 0)),                  # mask (resident)
        pl.BlockSpec((batch_tile, S, S), lambda b, l: (0, 0, 0)),   # filter (resident)
    ] + [layer_spec(params[k]) for k in PARAM_ORDER]

    out_spec = pl.BlockSpec((batch_tile, S, H), lambda b, l: (b, 0, 0))

    return pl.pallas_call(
        kernel,
        out_shape=jax.ShapeDtypeStruct((B, S, H), jnp.float32),
        grid_spec=pltpu.PrefetchScalarGridSpec(
            num_scalar_prefetch=0,
            grid=(nb, L),
            in_specs=in_specs,
            out_specs=out_spec,
            scratch_shapes=[pltpu.VMEM((batch_tile * S, H), jnp.bfloat16)],
        ),
        compiler_params=pltpu.CompilerParams(
            dimension_semantics=("parallel", "arbitrary"),
            vmem_limit_bytes=vmem_limit),
    )(x, mask2, filt_b, *[params[k] for k in PARAM_ORDER])


# ----------------------------------------------------------------------------
# Encoder: matches BSARecEncoder.forward's return convention.
# ----------------------------------------------------------------------------
def bsarec_encoder(x, mask, filt, params, *, alpha, num_heads,
                   output_all_encoded_layers=False):
    """Returns [input, final] when output_all_encoded_layers=False (as the
    PyTorch module does), else [input, h1, ..., hL]."""
    all_encoder_layers = [x]
    if output_all_encoded_layers:
        L = params["wqkv"].shape[0]
        h = x
        for l in range(L):
            p_l = {k: v[l:l + 1] for k, v in params.items()}
            h = bsarec_forward(h, mask, filt, p_l, alpha=alpha,
                               num_heads=num_heads)
            all_encoder_layers.append(h)
        return all_encoder_layers
    h = bsarec_forward(x, mask, filt, params, alpha=alpha, num_heads=num_heads)
    all_encoder_layers.append(h)
    return all_encoder_layers


# ----------------------------------------------------------------------------
# Pure-JAX reference (real rfft/irfft, exact GELU, f32 weights) for checking
# ----------------------------------------------------------------------------
def _layer_norm_ref(x, g, b, eps=1e-12):
    u = x.mean(-1, keepdims=True)
    s = ((x - u) ** 2).mean(-1, keepdims=True)
    return g * (x - u) / jnp.sqrt(s + eps) + b


def block_ref(x, mask4, p, *, alpha, num_heads, c_freq):
    B, S, H = x.shape
    hd = H // num_heads
    xf = jnp.fft.rfft(x, axis=1, norm="ortho")
    xf = xf.at[:, c_freq:, :].set(0)
    low = jnp.fft.irfft(xf, n=S, axis=1, norm="ortho")
    high = x - low
    emb = low + (p["sqrt_beta"] ** 2) * high
    dsp = _layer_norm_ref(emb + x, p["ln1_g"], p["ln1_b"])
    q = x @ p["wq"] + p["bq"]
    k = x @ p["wk"] + p["bk"]
    v = x @ p["wv"] + p["bv"]
    split = lambda t: t.reshape(B, S, num_heads, hd).transpose(0, 2, 1, 3)
    qh, kh, vh = split(q), split(k), split(v)
    scores = jnp.einsum("bhqd,bhkd->bhqk", qh, kh) / math.sqrt(hd) + mask4
    probs = jax.nn.softmax(scores, axis=-1)
    ctx = jnp.einsum("bhqk,bhkd->bhqd", probs, vh).transpose(0, 2, 1, 3).reshape(B, S, H)
    attn = ctx @ p["wo"] + p["bo"]
    gsp = _layer_norm_ref(attn + x, p["ln2_g"], p["ln2_b"])
    hidden = alpha * dsp + (1.0 - alpha) * gsp
    inter = jax.nn.gelu(hidden @ p["w1"] + p["b1"], approximate=False)
    ff = inter @ p["w2"] + p["b2"]
    return _layer_norm_ref(ff + hidden, p["ln3_g"], p["ln3_b"])


# ----------------------------------------------------------------------------
if __name__ == "__main__":
    # args: hidden_size=32, heads=2, layers=2, c=5, alpha=0.7
    B, S, H = 2, 8, 32
    num_heads = 2
    num_layers = 2
    d_ff = 4 * H
    c = 5
    c_freq = c // 2 + 1
    alpha = 0.7

    key = jax.random.PRNGKey(0)

    layers_f32 = []
    for _ in range(num_layers):
        key, *ks = jax.random.split(key, 10)

        def lin(k_, fan_in, fan_out):
            kw, kb = jax.random.split(k_)
            w = (jax.random.normal(kw, (fan_in, fan_out)) * 0.02).astype(jnp.float32)
            b = (jax.random.normal(kb, (1, fan_out)) * 0.02).astype(jnp.float32)
            return w, b

        wq, bq = lin(ks[0], H, H)
        wk, bk = lin(ks[1], H, H)
        wv, bv = lin(ks[2], H, H)
        wo, bo = lin(ks[3], H, H)
        w1, b1 = lin(ks[4], H, d_ff)
        w2, b2 = lin(ks[5], d_ff, H)
        layers_f32.append(dict(
            sqrt_beta=jax.random.normal(ks[6], (1, H), jnp.float32),
            ln1_g=jnp.ones((1, H), jnp.float32), ln1_b=jnp.zeros((1, H), jnp.float32),
            wq=wq, bq=bq, wk=wk, bk=bk, wv=wv, bv=bv, wo=wo, bo=bo,
            ln2_g=jnp.ones((1, H), jnp.float32), ln2_b=jnp.zeros((1, H), jnp.float32),
            w1=w1, b1=b1, w2=w2, b2=b2,
            ln3_g=jnp.ones((1, H), jnp.float32), ln3_b=jnp.zeros((1, H), jnp.float32),
        ))

    stack = lambda name: jnp.stack([p[name] for p in layers_f32], axis=0)
    params = dict(
        sqrt_beta=stack("sqrt_beta"),
        ln1_g=stack("ln1_g"), ln1_b=stack("ln1_b"),
        wqkv=jnp.concatenate([stack("wq"), stack("wk"), stack("wv")],
                             axis=2).astype(jnp.bfloat16),
        bqkv=jnp.concatenate([stack("bq"), stack("bk"), stack("bv")], axis=2),
        wo=stack("wo").astype(jnp.bfloat16), bo=stack("bo"),
        ln2_g=stack("ln2_g"), ln2_b=stack("ln2_b"),
        w1=stack("w1").astype(jnp.bfloat16), b1=stack("b1"),
        w2=stack("w2").astype(jnp.bfloat16), b2=stack("b2"),
        ln3_g=stack("ln3_g"), ln3_b=stack("ln3_b"),
    )

    # Inputs
    key, kx = jax.random.split(key)
    hidden_states = jax.random.normal(kx, (B, S, H), jnp.float32)
    causal = jnp.tril(jnp.ones((S, S), jnp.float32))
    mask2 = ((1.0 - causal) * -10000.0).astype(jnp.float32)   # shared (S,S) additive mask
    mask4 = mask2[None, None, :, :]                            # module layout for reference

    # Precompute the rfft low-pass projection matrix F (low = F @ x on seq axis).
    eye = np.eye(S, dtype=np.float64)
    Xf = np.fft.rfft(eye, axis=0, norm="ortho")
    Xf[c_freq:, :] = 0
    filt = jnp.asarray(np.fft.irfft(Xf, n=S, axis=0, norm="ortho").astype(np.float32))

    # Run the fused Pallas encoder (output_all_encoded_layers=False -> [input, final])
    outs = bsarec_encoder(hidden_states, mask2, filt, params,
                          alpha=alpha, num_heads=num_heads,
                          output_all_encoded_layers=False)
    final = jax.block_until_ready(outs[-1])

    # Pure-JAX reference check (f32, exact FFT + exact GELU)
    ref = hidden_states
    for l in range(num_layers):
        ref = block_ref(ref, mask4, layers_f32[l], alpha=alpha,
                        num_heads=num_heads, c_freq=c_freq)
    ref = jax.block_until_ready(ref)

    max_err = float(jnp.max(jnp.abs(final - ref)))
    assert final.shape == (B, S, H)
    assert max_err < 5e-2, f"mismatch vs reference: {max_err}"
    print("KERNEL_OK")
</pallas_src>

<mosaic_0001>
module attributes {stable_mosaic.version = 11 : i64} {
  func.func @bsarec_fused_kernel(%arg0: i32, %arg1: i32, %arg2: memref<1x8x32xf32, #tpu.memory_space<vmem>>, %arg3: memref<8x8xf32, #tpu.memory_space<vmem>>, %arg4: memref<1x8x8xf32, #tpu.memory_space<vmem>>, %arg5: memref<1x1x32xf32, #tpu.memory_space<vmem>>, %arg6: memref<1x1x32xf32, #tpu.memory_space<vmem>>, %arg7: memref<1x1x32xf32, #tpu.memory_space<vmem>>, %arg8: memref<1x32x96xbf16, #tpu.memory_space<vmem>>, %arg9: memref<1x1x96xf32, #tpu.memory_space<vmem>>, %arg10: memref<1x32x32xbf16, #tpu.memory_space<vmem>>, %arg11: memref<1x1x32xf32, #tpu.memory_space<vmem>>, %arg12: memref<1x1x32xf32, #tpu.memory_space<vmem>>, %arg13: memref<1x1x32xf32, #tpu.memory_space<vmem>>, %arg14: memref<1x32x128xbf16, #tpu.memory_space<vmem>>, %arg15: memref<1x1x128xf32, #tpu.memory_space<vmem>>, %arg16: memref<1x128x32xbf16, #tpu.memory_space<vmem>>, %arg17: memref<1x1x32xf32, #tpu.memory_space<vmem>>, %arg18: memref<1x1x32xf32, #tpu.memory_space<vmem>>, %arg19: memref<1x1x32xf32, #tpu.memory_space<vmem>>, %arg20: memref<1x8x32xf32, #tpu.memory_space<vmem>>, %arg21: memref<8x32xbf16, #tpu.memory_space<vmem>>) attributes {dimension_semantics = [#tpu.dimension_semantics<parallel>, #tpu.dimension_semantics<arbitrary>], iteration_bounds = array<i64: 2, 2>, scalar_prefetch = 0 : i64, scratch_operands = 1 : i64, tpu.core_type = #tpu.core_type<tc>, window_params = [{transform_indices = @transform_0, window_bounds = array<i64: 1, 8, 32>}, {pipeline_mode = #tpu.pipeline_mode<synchronous>, transform_indices = @transform_1, window_bounds = array<i64: 8, 8>}, {pipeline_mode = #tpu.pipeline_mode<synchronous>, transform_indices = @transform_2, window_bounds = array<i64: 1, 8, 8>}, {transform_indices = @transform_3, window_bounds = array<i64: 1, 1, 32>}, {transform_indices = @transform_4, window_bounds = array<i64: 1, 1, 32>}, {transform_indices = @transform_5, window_bounds = array<i64: 1, 1, 32>}, {transform_indices = @transform_6, window_bounds = array<i64: 1, 32, 96>}, {transform_indices = @transform_7, window_bounds = array<i64: 1, 1, 96>}, {transform_indices = @transform_8, window_bounds = array<i64: 1, 32, 32>}, {transform_indices = @transform_9, window_bounds = array<i64: 1, 1, 32>}, {transform_indices = @transform_10, window_bounds = array<i64: 1, 1, 32>}, {transform_indices = @transform_11, window_bounds = array<i64: 1, 1, 32>}, {transform_indices = @transform_12, window_bounds = array<i64: 1, 32, 128>}, {transform_indices = @transform_13, window_bounds = array<i64: 1, 1, 128>}, {transform_indices = @transform_14, window_bounds = array<i64: 1, 128, 32>}, {transform_indices = @transform_15, window_bounds = array<i64: 1, 1, 32>}, {transform_indices = @transform_16, window_bounds = array<i64: 1, 1, 32>}, {transform_indices = @transform_17, window_bounds = array<i64: 1, 1, 32>}, {transform_indices = @transform_18, window_bounds = array<i64: 1, 8, 32>}]} {
    %c0_i32 = arith.constant 0 : i32
    %0 = arith.cmpi eq, %arg1, %c0_i32 : i32
    %c0 = arith.constant 0 : index
    %c0_0 = arith.constant 0 : index
    %c0_1 = arith.constant 0 : index
    %1 = vector.load %arg2[%c0, %c0_0, %c0_1] : memref<1x8x32xf32, #tpu.memory_space<vmem>>, vector<1x8x32xf32>
    %c0_2 = arith.constant 0 : index
    %c0_3 = arith.constant 0 : index
    %c0_4 = arith.constant 0 : index
    %2 = vector.load %arg20[%c0_2, %c0_3, %c0_4] : memref<1x8x32xf32, #tpu.memory_space<vmem>>, vector<1x8x32xf32>
    %3 = arith.select %0, %1, %2 : vector<1x8x32xf32>
    %4 = vector.shape_cast %3 : vector<1x8x32xf32> to vector<8x32xf32>
    %5 = arith.truncf %4 : vector<8x32xf32> to vector<8x32xbf16>
    %c0_5 = arith.constant 0 : index
    %c0_6 = arith.constant 0 : index
    %c0_7 = arith.constant 0 : index
    %6 = vector.load %arg4[%c0_5, %c0_6, %c0_7] : memref<1x8x8xf32, #tpu.memory_space<vmem>>, vector<1x8x8xf32>
    "tpu.trace_start"() <{level = 10 : i32, message = "bsk,bkh->bsh"}> : () -> ()
    %cst = arith.constant dense<0.000000e+00> : vector<1x8x32xf32>
    %7 = tpu.matmul %6, %3, %cst {dimension_numbers = #tpu.dot_dimension_numbers<[2], [1], [1], [2], [0, 0, 0, 1, 1, 2], [0], [0]>} : vector<1x8x8xf32>, vector<1x8x32xf32>, vector<1x8x32xf32> -> vector<1x8x32xf32>
    "tpu.trace_stop"() : () -> ()
    %8 = vector.shape_cast %7 : vector<1x8x32xf32> to vector<8x32xf32>
    %9 = arith.subf %4, %8 : vector<8x32xf32>
    %c0_8 = arith.constant 0 : index
    %c0_9 = arith.constant 0 : index
    %c0_10 = arith.constant 0 : index
    %10 = vector.load %arg5[%c0_8, %c0_9, %c0_10] : memref<1x1x32xf32, #tpu.memory_space<vmem>>, vector<1x1x32xf32>
    %11 = vector.shape_cast %10 : vector<1x1x32xf32> to vector<1x32xf32>
    %12 = arith.mulf %11, %11 : vector<1x32xf32>
    %13 = vector.broadcast %12 : vector<1x32xf32> to vector<8x32xf32>
    %14 = arith.mulf %13, %9 : vector<8x32xf32>
    %15 = arith.addf %8, %14 : vector<8x32xf32>
    %16 = arith.addf %15, %4 : vector<8x32xf32>
    %c0_11 = arith.constant 0 : index
    %c0_12 = arith.constant 0 : index
    %c0_13 = arith.constant 0 : index
    %17 = vector.load %arg6[%c0_11, %c0_12, %c0_13] : memref<1x1x32xf32, #tpu.memory_space<vmem>>, vector<1x1x32xf32>
    %18 = vector.shape_cast %17 : vector<1x1x32xf32> to vector<1x32xf32>
    %c0_14 = arith.constant 0 : index
    %c0_15 = arith.constant 0 : index
    %c0_16 = arith.constant 0 : index
    %19 = vector.load %arg7[%c0_14, %c0_15, %c0_16] : memref<1x1x32xf32, #tpu.memory_space<vmem>>, vector<1x1x32xf32>
    %20 = vector.shape_cast %19 : vector<1x1x32xf32> to vector<1x32xf32>
    %cst_17 = arith.constant dense<0.000000e+00> : vector<8xf32>
    %21 = vector.multi_reduction <add>, %16, %cst_17 [1] : vector<8x32xf32> to vector<8xf32>
    %22 = vector.shape_cast %21 : vector<8xf32> to vector<8x1xf32>
    %cst_18 = arith.constant 3.200000e+01 : f32
    %23 = vector.broadcast %cst_18 : f32 to vector<8x1xf32>
    %24 = arith.divf %22, %23 : vector<8x1xf32>
    %25 = vector.broadcast %24 : vector<8x1xf32> to vector<8x32xf32>
    %26 = arith.subf %16, %25 : vector<8x32xf32>
    %27 = arith.mulf %26, %26 : vector<8x32xf32>
    %cst_19 = arith.constant dense<0.000000e+00> : vector<8xf32>
    %28 = vector.multi_reduction <add>, %27, %cst_19 [1] : vector<8x32xf32> to vector<8xf32>
    %29 = vector.shape_cast %28 : vector<8xf32> to vector<8x1xf32>
    %cst_20 = arith.constant 3.200000e+01 : f32
    %30 = vector.broadcast %cst_20 : f32 to vector<8x1xf32>
    %31 = arith.divf %29, %30 : vector<8x1xf32>
    %32 = vector.broadcast %18 : vector<1x32xf32> to vector<8x32xf32>
    %33 = arith.mulf %32, %26 : vector<8x32xf32>
    %cst_21 = arith.constant 9.99999996E-13 : f32
    %34 = vector.broadcast %cst_21 : f32 to vector<8x1xf32>
    %35 = arith.addf %31, %34 : vector<8x1xf32>
    %36 = math.rsqrt %35 : vector<8x1xf32>
    %37 = vector.broadcast %36 : vector<8x1xf32> to vector<8x32xf32>
    %38 = arith.mulf %33, %37 : vector<8x32xf32>
    %39 = vector.broadcast %20 : vector<1x32xf32> to vector<8x32xf32>
    %40 = arith.addf %38, %39 : vector<8x32xf32>
    %c0_22 = arith.constant 0 : index
    %c0_23 = arith.constant 0 : index
    %c0_24 = arith.constant 0 : index
    %41 = vector.load %arg8[%c0_22, %c0_23, %c0_24] : memref<1x32x96xbf16, #tpu.memory_space<vmem>>, vector<1x32x96xbf16>
    %42 = vector.shape_cast %41 : vector<1x32x96xbf16> to vector<32x96xbf16>
    %cst_25 = arith.constant dense<0.000000e+00> : vector<8x96xf32>
    %43 = tpu.matmul %5, %42, %cst_25 {dimension_numbers = #tpu.dot_dimension_numbers<[1], [0], [0], [1], [0, 0, 1, 1], [], []>} : vector<8x32xbf16>, vector<32x96xbf16>, vector<8x96xf32> -> vector<8x96xf32>
    %c0_26 = arith.constant 0 : index
    %c0_27 = arith.constant 0 : index
    %c0_28 = arith.constant 0 : index
    %44 = vector.load %arg9[%c0_26, %c0_27, %c0_28] : memref<1x1x96xf32, #tpu.memory_space<vmem>>, vector<1x1x96xf32>
    %45 = vector.shape_cast %44 : vector<1x1x96xf32> to vector<1x96xf32>
    %46 = vector.broadcast %45 : vector<1x96xf32> to vector<8x96xf32>
    %47 = arith.addf %43, %46 : vector<8x96xf32>
    %48 = arith.truncf %47 : vector<8x96xf32> to vector<8x96xbf16>
    %49 = vector.extract_strided_slice %48 {offsets = [0, 0], sizes = [8, 16], strides = [1, 1]} : vector<8x96xbf16> to vector<8x16xbf16>
    %50 = vector.shape_cast %49 : vector<8x16xbf16> to vector<1x8x16xbf16>
    %51 = vector.extract_strided_slice %48 {offsets = [0, 16], sizes = [8, 16], strides = [1, 1]} : vector<8x96xbf16> to vector<8x16xbf16>
    %52 = vector.shape_cast %51 : vector<8x16xbf16> to vector<1x8x16xbf16>
    %53 = tpu.concatenate %50, %52 in 0 : vector<1x8x16xbf16>, vector<1x8x16xbf16> -> vector<2x8x16xbf16>
    %54 = vector.extract_strided_slice %48 {offsets = [0, 32], sizes = [8, 16], strides = [1, 1]} : vector<8x96xbf16> to vector<8x16xbf16>
    %55 = vector.shape_cast %54 : vector<8x16xbf16> to vector<1x8x16xbf16>
    %56 = vector.extract_strided_slice %48 {offsets = [0, 48], sizes = [8, 16], strides = [1, 1]} : vector<8x96xbf16> to vector<8x16xbf16>
    %57 = vector.shape_cast %56 : vector<8x16xbf16> to vector<1x8x16xbf16>
    %58 = tpu.concatenate %55, %57 in 0 : vector<1x8x16xbf16>, vector<1x8x16xbf16> -> vector<2x8x16xbf16>
    %59 = vector.extract_strided_slice %48 {offsets = [0, 64], sizes = [8, 16], strides = [1, 1]} : vector<8x96xbf16> to vector<8x16xbf16>
    %60 = vector.shape_cast %59 : vector<8x16xbf16> to vector<1x8x16xbf16>
    %61 = vector.extract_strided_slice %48 {offsets = [0, 80], sizes = [8, 16], strides = [1, 1]} : vector<8x96xbf16> to vector<8x16xbf16>
    %62 = vector.shape_cast %61 : vector<8x16xbf16> to vector<1x8x16xbf16>
    %63 = tpu.concatenate %60, %62 in 0 : vector<1x8x16xbf16>, vector<1x8x16xbf16> -> vector<2x8x16xbf16>
    "tpu.trace_start"() <{level = 10 : i32, message = "gqd,gkd->gqk"}> : () -> ()
    %cst_29 = arith.constant dense<0.000000e+00> : vector<2x8x8xf32>
    %64 = tpu.matmul %53, %58, %cst_29 {dimension_numbers = #tpu.dot_dimension_numbers<[2], [2], [1], [1], [0, 0, 0, 1, 1, 1], [0], [0]>} : vector<2x8x16xbf16>, vector<2x8x16xbf16>, vector<2x8x8xf32> -> vector<2x8x8xf32>
    "tpu.trace_stop"() : () -> ()
    %cst_30 = arith.constant 2.500000e-01 : f32
    %65 = vector.broadcast %cst_30 : f32 to vector<2x8x8xf32>
    %66 = arith.mulf %64, %65 : vector<2x8x8xf32>
    %c0_31 = arith.constant 0 : index
    %c0_32 = arith.constant 0 : index
    %67 = vector.load %arg3[%c0_31, %c0_32] : memref<8x8xf32, #tpu.memory_space<vmem>>, vector<8x8xf32>
    %68 = vector.shape_cast %67 : vector<8x8xf32> to vector<1x8x8xf32>
    %69 = vector.broadcast %68 : vector<1x8x8xf32> to vector<2x8x8xf32>
    %70 = arith.addf %66, %69 : vector<2x8x8xf32>
    %cst_33 = arith.constant dense<0xFF800000> : vector<2x8xf32>
    %71 = vector.multi_reduction <maximumf>, %70, %cst_33 [2] : vector<2x8x8xf32> to vector<2x8xf32>
    %72 = vector.shape_cast %71 : vector<2x8xf32> to vector<2x8x1xf32>
    %73 = vector.broadcast %72 : vector<2x8x1xf32> to vector<2x8x8xf32>
    %74 = arith.subf %70, %73 : vector<2x8x8xf32>
    %75 = math.exp %74 : vector<2x8x8xf32>
    %cst_34 = arith.constant dense<0.000000e+00> : vector<2x8xf32>
    %76 = vector.multi_reduction <add>, %75, %cst_34 [2] : vector<2x8x8xf32> to vector<2x8xf32>
    %77 = vector.shape_cast %76 : vector<2x8xf32> to vector<2x8x1xf32>
    %78 = tpu.reciprocal %77 {approx = true} : vector<2x8x1xf32> -> vector<2x8x1xf32>
    %79 = vector.broadcast %78 : vector<2x8x1xf32> to vector<2x8x8xf32>
    %80 = arith.mulf %75, %79 : vector<2x8x8xf32>
    %81 = arith.truncf %80 : vector<2x8x8xf32> to vector<2x8x8xbf16>
    "tpu.trace_start"() <{level = 10 : i32, message = "gqk,gkd->gqd"}> : () -> ()
    %cst_35 = arith.constant dense<0.000000e+00> : vector<2x8x16xf32>
    %82 = tpu.matmul %81, %63, %cst_35 {dimension_numbers = #tpu.dot_dimension_numbers<[2], [1], [1], [2], [0, 0, 0, 1, 1, 2], [0], [0]>} : vector<2x8x8xbf16>, vector<2x8x16xbf16>, vector<2x8x16xf32> -> vector<2x8x16xf32>
    "tpu.trace_stop"() : () -> ()
    %83 = vector.extract_strided_slice %82 {offsets = [0, 0, 0], sizes = [1, 8, 16], strides = [1, 1, 1]} : vector<2x8x16xf32> to vector<1x8x16xf32>
    %84 = vector.shape_cast %83 : vector<1x8x16xf32> to vector<8x16xf32>
    %85 = arith.truncf %84 : vector<8x16xf32> to vector<8x16xbf16>
    %c0_36 = arith.constant 0 : index
    %c0_37 = arith.constant 0 : index
    %86 = vector.load %arg21[%c0_36, %c0_37] : memref<8x32xbf16, #tpu.memory_space<vmem>>, vector<8x16xbf16>
    tpu.vector_store %arg21[%c0_36, %c0_37], %85 {strides = array<i32>} : memref<8x32xbf16, #tpu.memory_space<vmem>>, vector<8x16xbf16>,
    %87 = vector.extract_strided_slice %82 {offsets = [1, 0, 0], sizes = [1, 8, 16], strides = [1, 1, 1]} : vector<2x8x16xf32> to vector<1x8x16xf32>
    %88 = vector.shape_cast %87 : vector<1x8x16xf32> to vector<8x16xf32>
    %89 = arith.truncf %88 : vector<8x16xf32> to vector<8x16xbf16>
    %c0_38 = arith.constant 0 : index
    %c16 = arith.constant 16 : index
    %90 = vector.load %arg21[%c0_38, %c16] : memref<8x32xbf16, #tpu.memory_space<vmem>>, vector<8x16xbf16>
    tpu.vector_store %arg21[%c0_38, %c16], %89 {strides = array<i32>} : memref<8x32xbf16, #tpu.memory_space<vmem>>, vector<8x16xbf16>,
    %c0_39 = arith.constant 0 : index
    %c0_40 = arith.constant 0 : index
    %91 = vector.load %arg21[%c0_39, %c0_40] : memref<8x32xbf16, #tpu.memory_space<vmem>>, vector<8x32xbf16>
    %c0_41 = arith.constant 0 : index
    %c0_42 = arith.constant 0 : index
    %c0_43 = arith.constant 0 : index
    %92 = vector.load %arg10[%c0_41, %c0_42, %c0_43] : memref<1x32x32xbf16, #tpu.memory_space<vmem>>, vector<1x32x32xbf16>
    %93 = vector.shape_cast %92 : vector<1x32x32xbf16> to vector<32x32xbf16>
    %cst_44 = arith.constant dense<0.000000e+00> : vector<8x32xf32>
    %94 = tpu.matmul %91, %93, %cst_44 {dimension_numbers = #tpu.dot_dimension_numbers<[1], [0], [0], [1], [0, 0, 1, 1], [], []>} : vector<8x32xbf16>, vector<32x32xbf16>, vector<8x32xf32> -> vector<8x32xf32>
    %c0_45 = arith.constant 0 : index
    %c0_46 = arith.constant 0 : index
    %c0_47 = arith.constant 0 : index
    %95 = vector.load %arg11[%c0_45, %c0_46, %c0_47] : memref<1x1x32xf32, #tpu.memory_space<vmem>>, vector<1x1x32xf32>
    %96 = vector.shape_cast %95 : vector<1x1x32xf32> to vector<1x32xf32>
    %97 = vector.broadcast %96 : vector<1x32xf32> to vector<8x32xf32>
    %98 = arith.addf %94, %97 : vector<8x32xf32>
    %99 = arith.addf %98, %4 : vector<8x32xf32>
    %c0_48 = arith.constant 0 : index
    %c0_49 = arith.constant 0 : index
    %c0_50 = arith.constant 0 : index
    %100 = vector.load %arg12[%c0_48, %c0_49, %c0_50] : memref<1x1x32xf32, #tpu.memory_space<vmem>>, vector<1x1x32xf32>
    %101 = vector.shape_cast %100 : vector<1x1x32xf32> to vector<1x32xf32>
    %c0_51 = arith.constant 0 : index
    %c0_52 = arith.constant 0 : index
    %c0_53 = arith.constant 0 : index
    %102 = vector.load %arg13[%c0_51, %c0_52, %c0_53] : memref<1x1x32xf32, #tpu.memory_space<vmem>>, vector<1x1x32xf32>
    %103 = vector.shape_cast %102 : vector<1x1x32xf32> to vector<1x32xf32>
    %cst_54 = arith.constant dense<0.000000e+00> : vector<8xf32>
    %104 = vector.multi_reduction <add>, %99, %cst_54 [1] : vector<8x32xf32> to vector<8xf32>
    %105 = vector.shape_cast %104 : vector<8xf32> to vector<8x1xf32>
    %cst_55 = arith.constant 3.200000e+01 : f32
    %106 = vector.broadcast %cst_55 : f32 to vector<8x1xf32>
    %107 = arith.divf %105, %106 : vector<8x1xf32>
    %108 = vector.broadcast %107 : vector<8x1xf32> to vector<8x32xf32>
    %109 = arith.subf %99, %108 : vector<8x32xf32>
    %110 = arith.mulf %109, %109 : vector<8x32xf32>
    %cst_56 = arith.constant dense<0.000000e+00> : vector<8xf32>
    %111 = vector.multi_reduction <add>, %110, %cst_56 [1] : vector<8x32xf32> to vector<8xf32>
    %112 = vector.shape_cast %111 : vector<8xf32> to vector<8x1xf32>
    %cst_57 = arith.constant 3.200000e+01 : f32
    %113 = vector.broadcast %cst_57 : f32 to vector<8x1xf32>
    %114 = arith.divf %112, %113 : vector<8x1xf32>
    %115 = vector.broadcast %101 : vector<1x32xf32> to vector<8x32xf32>
    %116 = arith.mulf %115, %109 : vector<8x32xf32>
    %cst_58 = arith.constant 9.99999996E-13 : f32
    %117 = vector.broadcast %cst_58 : f32 to vector<8x1xf32>
    %118 = arith.addf %114, %117 : vector<8x1xf32>
    %119 = math.rsqrt %118 : vector<8x1xf32>
    %120 = vector.broadcast %119 : vector<8x1xf32> to vector<8x32xf32>
    %121 = arith.mulf %116, %120 : vector<8x32xf32>
    %122 = vector.broadcast %103 : vector<1x32xf32> to vector<8x32xf32>
    %123 = arith.addf %121, %122 : vector<8x32xf32>
    %cst_59 = arith.constant 0.699999988 : f32
    %124 = vector.broadcast %cst_59 : f32 to vector<8x32xf32>
    %125 = arith.mulf %124, %40 : vector<8x32xf32>
    %cst_60 = arith.constant 3.000000e-01 : f32
    %126 = vector.broadcast %cst_60 : f32 to vector<8x32xf32>
    %127 = arith.mulf %126, %123 : vector<8x32xf32>
    %128 = arith.addf %125, %127 : vector<8x32xf32>
    %129 = arith.truncf %128 : vector<8x32xf32> to vector<8x32xbf16>
    %c0_61 = arith.constant 0 : index
    %c0_62 = arith.constant 0 : index
    %c0_63 = arith.constant 0 : index
    %130 = vector.load %arg14[%c0_61, %c0_62, %c0_63] : memref<1x32x128xbf16, #tpu.memory_space<vmem>>, vector<1x32x128xbf16>
    %131 = vector.shape_cast %130 : vector<1x32x128xbf16> to vector<32x128xbf16>
    %cst_64 = arith.constant dense<0.000000e+00> : vector<8x128xf32>
    %132 = tpu.matmul %129, %131, %cst_64 {dimension_numbers = #tpu.dot_dimension_numbers<[1], [0], [0], [1], [0, 0, 1, 1], [], []>} : vector<8x32xbf16>, vector<32x128xbf16>, vector<8x128xf32> -> vector<8x128xf32>
    %c0_65 = arith.constant 0 : index
    %c0_66 = arith.constant 0 : index
    %c0_67 = arith.constant 0 : index
    %133 = vector.load %arg15[%c0_65, %c0_66, %c0_67] : memref<1x1x128xf32, #tpu.memory_space<vmem>>, vector<1x1x128xf32>
    %134 = vector.shape_cast %133 : vector<1x1x128xf32> to vector<1x128xf32>
    %135 = vector.broadcast %134 : vector<1x128xf32> to vector<8x128xf32>
    %136 = arith.addf %132, %135 : vector<8x128xf32>
    %cst_68 = arith.constant 5.000000e-01 : f32
    %137 = vector.broadcast %cst_68 : f32 to vector<8x128xf32>
    %138 = arith.mulf %137, %136 : vector<8x128xf32>
    %cst_69 = arith.constant 4.471500e-02 : f32
    %139 = vector.broadcast %cst_69 : f32 to vector<8x128xf32>
    %140 = arith.mulf %139, %136 : vector<8x128xf32>
    %141 = arith.mulf %140, %136 : vector<8x128xf32>
    %142 = arith.mulf %141, %136 : vector<8x128xf32>
    %143 = arith.addf %136, %142 : vector<8x128xf32>
    %cst_70 = arith.constant 0.797884583 : f32
    %144 = vector.broadcast %cst_70 : f32 to vector<8x128xf32>
    %145 = arith.mulf %144, %143 : vector<8x128xf32>
    %146 = math.tanh %145 : vector<8x128xf32>
    %cst_71 = arith.constant 1.000000e+00 : f32
    %147 = vector.broadcast %cst_71 : f32 to vector<8x128xf32>
    %148 = arith.addf %147, %146 : vector<8x128xf32>
    %149 = arith.mulf %138, %148 : vector<8x128xf32>
    %150 = arith.truncf %149 : vector<8x128xf32> to vector<8x128xbf16>
    %c0_72 = arith.constant 0 : index
    %c0_73 = arith.constant 0 : index
    %c0_74 = arith.constant 0 : index
    %151 = vector.load %arg16[%c0_72, %c0_73, %c0_74] : memref<1x128x32xbf16, #tpu.memory_space<vmem>>, vector<1x128x32xbf16>
    %152 = vector.shape_cast %151 : vector<1x128x32xbf16> to vector<128x32xbf16>
    %cst_75 = arith.constant dense<0.000000e+00> : vector<8x32xf32>
    %153 = tpu.matmul %150, %152, %cst_75 {dimension_numbers = #tpu.dot_dimension_numbers<[1], [0], [0], [1], [0, 0, 1, 1], [], []>} : vector<8x128xbf16>, vector<128x32xbf16>, vector<8x32xf32> -> vector<8x32xf32>
    %c0_76 = arith.constant 0 : index
    %c0_77 = arith.constant 0 : index
    %c0_78 = arith.constant 0 : index
    %154 = vector.load %arg17[%c0_76, %c0_77, %c0_78] : memref<1x1x32xf32, #tpu.memory_space<vmem>>, vector<1x1x32xf32>
    %155 = vector.shape_cast %154 : vector<1x1x32xf32> to vector<1x32xf32>
    %156 = vector.broadcast %155 : vector<1x32xf32> to vector<8x32xf32>
    %157 = arith.addf %153, %156 : vector<8x32xf32>
    %158 = arith.addf %157, %128 : vector<8x32xf32>
    %c0_79 = arith.constant 0 : index
    %c0_80 = arith.constant 0 : index
    %c0_81 = arith.constant 0 : index
    %159 = vector.load %arg18[%c0_79, %c0_80, %c0_81] : memref<1x1x32xf32, #tpu.memory_space<vmem>>, vector<1x1x32xf32>
    %160 = vector.shape_cast %159 : vector<1x1x32xf32> to vector<1x32xf32>
    %c0_82 = arith.constant 0 : index
    %c0_83 = arith.constant 0 : index
    %c0_84 = arith.constant 0 : index
    %161 = vector.load %arg19[%c0_82, %c0_83, %c0_84] : memref<1x1x32xf32, #tpu.memory_space<vmem>>, vector<1x1x32xf32>
    %162 = vector.shape_cast %161 : vector<1x1x32xf32> to vector<1x32xf32>
    %cst_85 = arith.constant dense<0.000000e+00> : vector<8xf32>
    %163 = vector.multi_reduction <add>, %158, %cst_85 [1] : vector<8x32xf32> to vector<8xf32>
    %164 = vector.shape_cast %163 : vector<8xf32> to vector<8x1xf32>
    %cst_86 = arith.constant 3.200000e+01 : f32
    %165 = vector.broadcast %cst_86 : f32 to vector<8x1xf32>
    %166 = arith.divf %164, %165 : vector<8x1xf32>
    %167 = vector.broadcast %166 : vector<8x1xf32> to vector<8x32xf32>
    %168 = arith.subf %158, %167 : vector<8x32xf32>
    %169 = arith.mulf %168, %168 : vector<8x32xf32>
    %cst_87 = arith.constant dense<0.000000e+00> : vector<8xf32>
    %170 = vector.multi_reduction <add>, %169, %cst_87 [1] : vector<8x32xf32> to vector<8xf32>
    %171 = vector.shape_cast %170 : vector<8xf32> to vector<8x1xf32>
    %cst_88 = arith.constant 3.200000e+01 : f32
    %172 = vector.broadcast %cst_88 : f32 to vector<8x1xf32>
    %173 = arith.divf %171, %172 : vector<8x1xf32>
    %174 = vector.broadcast %160 : vector<1x32xf32> to vector<8x32xf32>
    %175 = arith.mulf %174, %168 : vector<8x32xf32>
    %cst_89 = arith.constant 9.99999996E-13 : f32
    %176 = vector.broadcast %cst_89 : f32 to vector<8x1xf32>
    %177 = arith.addf %173, %176 : vector<8x1xf32>
    %178 = math.rsqrt %177 : vector<8x1xf32>
    %179 = vector.broadcast %178 : vector<8x1xf32> to vector<8x32xf32>
    %180 = arith.mulf %175, %179 : vector<8x32xf32>
    %181 = vector.broadcast %162 : vector<1x32xf32> to vector<8x32xf32>
    %182 = arith.addf %180, %181 : vector<8x32xf32>
    %183 = vector.shape_cast %182 : vector<8x32xf32> to vector<1x8x32xf32>
    %c0_90 = arith.constant 0 : index
    %c0_91 = arith.constant 0 : index
    %c0_92 = arith.constant 0 : index
    %184 = vector.load %arg20[%c0_90, %c0_91, %c0_92] : memref<1x8x32xf32, #tpu.memory_space<vmem>>, vector<1x8x32xf32>
    tpu.vector_store %arg20[%c0_90, %c0_91, %c0_92], %183 {strides = array<i32>} : memref<1x8x32xf32, #tpu.memory_space<vmem>>, vector<1x8x32xf32>,
    return
  }
  func.func @transform_0(%arg0: i32, %arg1: i32) -> (i32, i32, i32) {
    %c0_i32 = arith.constant 0 : i32
    %c0_i32_0 = arith.constant 0 : i32
    %c0_i32_1 = arith.constant 0 : i32
    return %arg0, %c0_i32, %c0_i32_0 : i32, i32, i32
  }
  func.func @transform_1(%arg0: i32, %arg1: i32) -> (i32, i32) {
    %c0_i32 = arith.constant 0 : i32
    %c0_i32_0 = arith.constant 0 : i32
    %c0_i32_1 = arith.constant 0 : i32
    return %c0_i32, %c0_i32_0 : i32, i32
  }
  func.func @transform_2(%arg0: i32, %arg1: i32) -> (i32, i32, i32) {
    %c0_i32 = arith.constant 0 : i32
    %c0_i32_0 = arith.constant 0 : i32
    %c0_i32_1 = arith.constant 0 : i32
    %c0_i32_2 = arith.constant 0 : i32
    return %c0_i32, %c0_i32_0, %c0_i32_1 : i32, i32, i32
  }
  func.func @transform_3(%arg0: i32, %arg1: i32) -> (i32, i32, i32) {
    %c0_i32 = arith.constant 0 : i32
    %c0_i32_0 = arith.constant 0 : i32
    %c0_i32_1 = arith.constant 0 : i32
    return %arg1, %c0_i32, %c0_i32_0 : i32, i32, i32
  }
  func.func @transform_4(%arg0: i32, %arg1: i32) -> (i32, i32, i32) {
    %c0_i32 = arith.constant 0 : i32
    %c0_i32_0 = arith.constant 0 : i32
    %c0_i32_1 = arith.constant 0 : i32
    return %arg1, %c0_i32, %c0_i32_0 : i32, i32, i32
  }
  func.func @transform_5(%arg0: i32, %arg1: i32) -> (i32, i32, i32) {
    %c0_i32 = arith.constant 0 : i32
    %c0_i32_0 = arith.constant 0 : i32
    %c0_i32_1 = arith.constant 0 : i32
    return %arg1, %c0_i32, %c0_i32_0 : i32, i32, i32
  }
  func.func @transform_6(%arg0: i32, %arg1: i32) -> (i32, i32, i32) {
    %c0_i32 = arith.constant 0 : i32
    %c0_i32_0 = arith.constant 0 : i32
    %c0_i32_1 = arith.constant 0 : i32
    return %arg1, %c0_i32, %c0_i32_0 : i32, i32, i32
  }
  func.func @transform_7(%arg0: i32, %arg1: i32) -> (i32, i32, i32) {
    %c0_i32 = arith.constant 0 : i32
    %c0_i32_0 = arith.constant 0 : i32
    %c0_i32_1 = arith.constant 0 : i32
    return %arg1, %c0_i32, %c0_i32_0 : i32, i32, i32
  }
  func.func @transform_8(%arg0: i32, %arg1: i32) -> (i32, i32, i32) {
    %c0_i32 = arith.constant 0 : i32
    %c0_i32_0 = arith.constant 0 : i32
    %c0_i32_1 = arith.constant 0 : i32
    return %arg1, %c0_i32, %c0_i32_0 : i32, i32, i32
  }
  func.func @transform_9(%arg0: i32, %arg1: i32) -> (i32, i32, i32) {
    %c0_i32 = arith.constant 0 : i32
    %c0_i32_0 = arith.constant 0 : i32
    %c0_i32_1 = arith.constant 0 : i32
    return %arg1, %c0_i32, %c0_i32_0 : i32, i32, i32
  }
  func.func @transform_10(%arg0: i32, %arg1: i32) -> (i32, i32, i32) {
    %c0_i32 = arith.constant 0 : i32
    %c0_i32_0 = arith.constant 0 : i32
    %c0_i32_1 = arith.constant 0 : i32
    return %arg1, %c0_i32, %c0_i32_0 : i32, i32, i32
  }
  func.func @transform_11(%arg0: i32, %arg1: i32) -> (i32, i32, i32) {
    %c0_i32 = arith.constant 0 : i32
    %c0_i32_0 = arith.constant 0 : i32
    %c0_i32_1 = arith.constant 0 : i32
    return %arg1, %c0_i32, %c0_i32_0 : i32, i32, i32
  }
  func.func @transform_12(%arg0: i32, %arg1: i32) -> (i32, i32, i32) {
    %c0_i32 = arith.constant 0 : i32
    %c0_i32_0 = arith.constant 0 : i32
    %c0_i32_1 = arith.constant 0 : i32
    return %arg1, %c0_i32, %c0_i32_0 : i32, i32, i32
  }
  func.func @transform_13(%arg0: i32, %arg1: i32) -> (i32, i32, i32) {
    %c0_i32 = arith.constant 0 : i32
    %c0_i32_0 = arith.constant 0 : i32
    %c0_i32_1 = arith.constant 0 : i32
    return %arg1, %c0_i32, %c0_i32_0 : i32, i32, i32
  }
  func.func @transform_14(%arg0: i32, %arg1: i32) -> (i32, i32, i32) {
    %c0_i32 = arith.constant 0 : i32
    %c0_i32_0 = arith.constant 0 : i32
    %c0_i32_1 = arith.constant 0 : i32
    return %arg1, %c0_i32, %c0_i32_0 : i32, i32, i32
  }
  func.func @transform_15(%arg0: i32, %arg1: i32) -> (i32, i32, i32) {
    %c0_i32 = arith.constant 0 : i32
    %c0_i32_0 = arith.constant 0 : i32
    %c0_i32_1 = arith.constant 0 : i32
    return %arg1, %c0_i32, %c0_i32_0 : i32, i32, i32
  }
  func.func @transform_16(%arg0: i32, %arg1: i32) -> (i32, i32, i32) {
    %c0_i32 = arith.constant 0 : i32
    %c0_i32_0 = arith.constant 0 : i32
    %c0_i32_1 = arith.constant 0 : i32
    return %arg1, %c0_i32, %c0_i32_0 : i32, i32, i32
  }
  func.func @transform_17(%arg0: i32, %arg1: i32) -> (i32, i32, i32) {
    %c0_i32 = arith.constant 0 : i32
    %c0_i32_0 = arith.constant 0 : i32
    %c0_i32_1 = arith.constant 0 : i32
    return %arg1, %c0_i32, %c0_i32_0 : i32, i32, i32
  }
  func.func @transform_18(%arg0: i32, %arg1: i32) -> (i32, i32, i32) {
    %c0_i32 = arith.constant 0 : i32
    %c0_i32_0 = arith.constant 0 : i32
    %c0_i32_1 = arith.constant 0 : i32
    return %arg0, %c0_i32, %c0_i32_0 : i32, i32, i32
  }
}

</mosaic_0001>

<bundles_post_ra>
// kernel: tpu_custom_call.1
= control target key start
LH: loop header
LB: loop body
LE: loop exit
PB: predicated region body
PF: predicated region fallthrough
CT: control target
= control target key end

     0   :  { %s2532_s0 = inlined_call_operand.vmem [shape: f32[2,8,32], index: 0, kind: input, shape index: {}]   ;;  %s2533_s1 = inlined_call_operand.vmem [shape: f32[8,8], index: 1, kind: input, shape index: {}]   ;;  %s2534_s2 = inlined_call_operand.vmem [shape: f32[1,8,8], index: 2, kind: input, shape index: {}]   ;;  %s2535_s3 = inlined_call_operand.vmem [shape: f32[2,1,32], index: 3, kind: input, shape index: {}]   ;;  %s2536_s4 = inlined_call_operand.vmem [shape: f32[2,1,32], index: 4, kind: input, shape index: {}]   ;;  %s2537_s5 = inlined_call_operand.vmem [shape: f32[2,1,32], index: 5, kind: input, shape index: {}]   ;;  %s2538_s6 = inlined_call_operand.vmem [shape: bf16[2,32,96], index: 6, kind: input, shape index: {}]   ;;  %s2539_s7 = inlined_call_operand.vmem [shape: f32[2,1,96], index: 7, kind: input, shape index: {}]   ;;  %s2540_s8 = inlined_call_operand.vmem [shape: bf16[2,32,32], index: 8, kind: input, shape index: {}]   ;;  %s2541_s9 = inlined_call_operand.vmem [shape: f32[2,1,32], index: 9, kind: input, shape index: {}]   ;;  %s2542_s10 = inlined_call_operand.vmem [shape: f32[2,1,32], index: 10, kind: input, shape index: {}]   ;;  %s2543_s11 = inlined_call_operand.vmem [shape: f32[2,1,32], index: 11, kind: input, shape index: {}]   ;;  %s2544_s12 = inlined_call_operand.vmem [shape: bf16[2,32,128], index: 12, kind: input, shape index: {}]   ;;  %s2545_s13 = inlined_call_operand.vmem [shape: f32[2,1,128], index: 13, kind: input, shape index: {}]   ;;  %s2546_s14 = inlined_call_operand.vmem [shape: bf16[2,128,32], index: 14, kind: input, shape index: {}]   ;;  %s2547_s15 = inlined_call_operand.vmem [shape: f32[2,1,32], index: 15, kind: input, shape index: {}]   ;;  %s2548_s16 = inlined_call_operand.vmem [shape: f32[2,1,32], index: 16, kind: input, shape index: {}]   ;;  %s2549_s17 = inlined_call_operand.vmem [shape: f32[2,1,32], index: 17, kind: input, shape index: {}]   ;;  %s2550_s18 = inlined_call_operand.hbm [shape: f32[2,8,32], index: 18, kind: output, shape index: {}]  }
   0x1   :  { %2561 = sst [smem:[#allocation15_spill]] %s2532_s0 }
   0x2   :  { %2562 = sst [smem:[#allocation16_spill]] %s2533_s1 }
   0x3   :  { %2563 = sst [smem:[#allocation17_spill]] %s2534_s2 }
   0x4   :  { %2564 = sst [smem:[#allocation18_spill]] %s2535_s3 }
   0x5   :  { %2565 = sst [smem:[#allocation19_spill]] %s2536_s4 }
   0x6   :  { %2566 = sst [smem:[#allocation20_spill]] %s2550_s18 }
   0x7   :  { %23 = vsyncpa [#allocation4], 0 }
   0x8   :  { %25 = vsyncpa [#allocation4 + $0x1], 0  ;;  %s2260_s27 = smov 0   ;;  %s2262_s28 = smov 0  }
   0x9   :  { %s2264_s29 = smov 0   ;;  %s2266_s30 = smov 0  }
   0xa   :  { %s2268_s0 = smov 0   ;;  %s2270_s19 = smov 0  }
   0xb   :  { %s2272_s1 = smov 0   ;;  %s2274_s20 = smov 0  }
   0xc LB: > { %2567 = sst [smem:[#allocation6_spill]] %s2128_s27  ;;  %s1799_s21 = sadd.s32 4294967295, %s2156_s20   ;;  %s2156_s20 = sphi %s2274_s20, %s31_s20   ;;  %s2152_s1 = sphi %s2272_s1, %s2594_s1   ;;  %s2148_s19 = sphi %s2270_s19, %s2593_s19   ;;  %s2144_s0 = sphi %s2268_s0, %s2597_s0   ;;  %s2140_s30 = sphi %s2266_s30, %s2591_s30   ;;  %s2136_s29 = sphi %s2264_s29, %s2590_s29   ;;  %s2132_s28 = sphi %s2262_s28, %s2596_s28   ;;  %s2128_s27 = sphi %s2260_s27, %s2595_s27  }
   0xd   : > { %2568 = sst [smem:[#allocation7_spill]] %s2136_s29  ;;  %s1800_s22 = sadd.s32 4294967294, %s2156_s20  }
   0xe   : > { %2569 = sst [smem:[#allocation8_spill]] %s2148_s19  ;;  %s40_s2 = sadd.s32 1, %s2148_s19 }
   0xf   : > { %2570 = sst [smem:[#allocation9_spill]] %s2152_s1  ;;  %p41_p0 = scmp.ge.s32.totalorder %s40_s2, 2 }
  0x10   : > { %2571 = sst [smem:[#allocation10_spill]] %s2156_s20  ;;  %s43_s23 = sadd.s32 1, %s2152_s1 }
  0x11   : > { %p518_p1 = scmp.ne.s32.totalorder %s2136_s29, %s2132_s28  ;;  %p519_p2 = scmp.eq.s32.totalorder %s1799_s21, 3 }
  0x12   : > { %s2599_s2 = smov (%p41_p0, %s40_s2), 0  ;;  %s2601_s23 = smov (!%p41_p0, %s43_s23), %s2152_s1 }
  0x13   : > { %2572 = sst [smem:[#allocation11_spill]] %s2599_s2  ;;  %p2309_p3 = por %p519_p2, %p518_p1 }
  0x14   : > { %p524_p4 = scmp.ne.s32.totalorder %s2132_s28, %s2128_s27  ;;  %p45_p5 = scmp.ge.s32.totalorder %s2601_s23, 2 }
  0x15   : > { %p525_p6 = scmp.eq.s32.totalorder %s1800_s22, 3  ;;  %p1803_p7 = scmp.ge.s32.totalorder %s2156_s20, 1 }
  0x16   : > { %p654_p8 = scmp.lt.s32.totalorder %s2156_s20, 5  ;;  %s2603_s23 = smov (%p45_p5, %s2601_s23), 0 }
  0x17   : > { %2574 = sst [smem:[#allocation12_spill]] %s2603_s23  ;;  %p2319_p9 = por %p525_p6, %p524_p4 }
  0x18   : > { %p655_p10 = pnand %p1803_p7, %p654_p8  ;;  %s505_s26 = ssub.s32 %s2152_s1, %s2603_s23 }
  0x19   : > { %s2575_s25 = scalar_select %p2319_p9, 1, 0 }
  0x1a   : > { %s508_s21 = sadd.s32 1, %s2136_s29  ;;  %p506_p11 = scmp.eq.s32.totalorder %s505_s26, 0 }
  0x1b   : > { %2576 = sst [smem:[#allocation13_spill]] %s2575_s25  ;;  %658 = sbr.rel (%p655_p10) target bundleno = 2567 (0xa07), region = 92 }
  0x1c   : > { %s2327_s2 = scalar_select %p506_p11, %s2136_s29, %s508_s21  }
  0x1d   : > { %s2554_s22 = sand.u32 (!%p655_p10), 1, %s2132_s28   ;;  %p760_p12 = scmp.lt.s32.totalorder (!%p655_p10), %s2144_s0, 1 }
  0x1e   : > { %2577 = sst [smem:[#allocation14_spill]] %s2327_s2  ;;  %s1804_s19 = sshll.u32 (!%p655_p10), %s2554_s22, 3 }
  0x1f   : > { %p818_p13 = scmp.eq.s32.totalorder (!%p655_p10), %s2140_s30, 0  ;;  %p764_p0 = scmp.lt.s32.totalorder (!%p655_p10), %s2140_s30, 1 }
  0x20   : > { %v2158_v0 = vmov 0.0   ;;  %vm2159_vm0 = vmmov 0   ;;  %s761_s26 = scalar_select %p760_p12, %s2144_s0, 1  ;;  %vm827_vm2 = vcmask 64512   ;;  %vm915_vm3 = vcmask 261120  }
  0x21   : > { %1884 = vmatprep.subr.mxu1 %v2158_v0  ;;  %1886 = vmatprep.mubr.msk.f32.mxu1 %vm2159_vm0, %v2158_v0  ;;  %s821_s21 = scalar_select %p818_p13, 1, 0  ;;  %vm1016_vm4 = vcmask 130048   ;;  %vm1145_vm5 = vcmask 1043456   ;;  %vm1238_vm6 = vcmask 125952   ;;  %vm1247_vm7 = vcmask 257152  }
  0x22   : > { %1909 = vmatprep.subr.bf16.mxu0 %v2158_v0  ;;  %1911 = vmatprep.mubr.msk.bf16.mxu0 %vm2159_vm0, %v2158_v0  ;;  %s1805_s23 = sshll.u32 %s761_s26, 3  ;;  %s2342_s1 = scalar_lea.vmem [#allocation3], %s1804_s19 }
  0x23   : > { %v820_v1 = vld [vmem:[%s2342_s1] sm:$0xff]  ;;  %s2578_s29 = sld [smem:[#allocation15_spill]]  ;;  %v822_v2 = vstv %s821_s21  ;;  %s2605_s30 = smov (!%p764_p0, %s2140_s30), 1 }
  0x24   : > { %vm823_vm1 = vcmp.eq.s32.totalorder %v822_v2, 1  ;;  %s2579_s18 = sld [smem:[#allocation17_spill]]  ;;  %s2360_s19 = sshll.u32 %s2605_s30, 4 }
  0x25   : > { %s2161_s22 = smov 96   ;;  %s2162_s27 = smov 64  }
  0x26   : > { %s785_s2 = scalar_lea.vmem %s2540_s8, %s2360_s19  ;;  %s2581_s3 = sld [smem:[#allocation18_spill]] }
  0x27   : > { %v2036_v60 = vld [vmem:[%s785_s2 + $0x8] sm:$0xff]   ;;  %v2037_v61 = vld [vmem:[%s785_s2] sm:$0xff]   ;;  %s799_s2 = scalar_lea.vmem %s2544_s12, %s2360_s19  ;;  %s2582_s4 = sld [smem:[#allocation19_spill]] }
  0x28   : > { %s791_s21 = scalar_lea.vmem %s2542_s10, %s2605_s30  ;;  %s2585_s20 = sand.u32 1, %s2132_s28  }
  0x29   : > { %s763_s25 = scalar_lea.vmem %s2578_s29, %s1805_s23  ;;  %s780_s23 = scalar_lea.vmem %s2539_s7, %s2605_s30 }
  0x2a   : > { %v819_v3 = vld [vmem:[%s763_s25] sm:$0xff]  ;;  %s2160_s25 = smov 112   ;;  %s2580_s29 = sld [smem:[#allocation16_spill]] }
  0x2b   : > { %v826_v4 = vld [vmem:[%s2579_s18] sm:$0xff]  ;;  %v2356_v5 = vsel %vm823_vm1, %v819_v3, %v820_v1  ;;  %s777_s18 = scalar_lea.vmem %s2538_s6, %s2360_s19 }
  0x2c   : > { %1885 = vmatpush3.msra.mxu1 %v2356_v5  ;;  %v2034_v6 = vld [vmem:[%s777_s18 + $0x8] sm:$0xff]   ;;  %v2035_v7 = vld [vmem:[%s777_s18] sm:$0xff]   ;;  %v825_v8 = vpack.c.bf16 %v2356_v5, %v2356_v5  ;;  %s766_s26 = scalar_lea.vmem %s2581_s3, %s2605_s30  ;;  %s772_s18 = scalar_lea.vmem %s2537_s5, %s2605_s30 }
  0x2d   : > { %1887 = vmatmul.mubr.msk.f32.vlgmr.msra.gmra.mxu1 %vm827_vm2, %v826_v4  ;;  %1889 = vmatprep.subr.bf16.mxu1 %v2158_v0  ;;  %v1817_v11 = vld [vmem:[%s780_s23] ss:$0 sm:$0xff]  ;;  %s2163_s23 = smov 16   ;;  %s769_s19 = scalar_lea.vmem %s2582_s4, %s2605_s30 }
  0x2e   : > { %1893 = vmatprep.mubr.msk.bf16.mxu1 %vm2159_vm0, %v2158_v0  ;;  %1890 = vmatpush3.bf16.msra.mxu1 %v2034_v6  ;;  %s794_s3 = scalar_lea.vmem %s2543_s11, %s2605_s30 }
  0x2f   : > { %1891 = vmatprep.subr.bf16.mxu1 %v2158_v0 }
  0x30   : > { %v1113_v24 = vld [vmem:[%s2580_s29] sm:$0xff] }
  0x32   : > { %1892 = vmatpush3.bf16.msra.mxu1 %v2035_v7 }
  0x33   : > { %1897 = vmatprep.subr.bf16.mxu1 %v2158_v0 }
  0x35   : > { %1894 = vmatmul.mubr.msk.bf16.vlgmr.msra.gmra.mxu1 %vm915_vm3, %v825_v8 }
  0x36   : > { %1899 = vmatprep.mubr.msk.bf16.mxu1 %vm2159_vm0, %v2158_v0 }
  0xed   : > { %v2377_v9 = vpop.f32.mrf.mxu1 }
  0xef   : > { %v1888_v10 = vpop.f32.mrf.mxu1 }
  0xf0   : > { %v905_v10 = vlaneseq }
  0xf5   : > { %v1004_v12 = vpop.f32.mrf.mxu1 }
  0xf6   : > { %v1005_v13 = vadd.f32 %v1817_v11, %v1004_v12  ;;  %v906_v12 = vshrl.u32 %v905_v10, 7 }
  0xf7   : > { %v1895_v14 = vpop.f32.mrf.mxu1 }
  0xf8   : > { %v1010_v15 = vpack.c.bf16 %v1005_v13, %v1005_v13  ;;  %v902_v13 = vld [vmem:[%s766_s26] sm:$0x1]  ;;  %s1582_s26 = sshll.u32 %s2342_s1, 4  ;;  %s1583_s26 = int_to_ptr.vmem [resolvable:$true] %s1582_s26 }
  0xf9   : > { %v1007_v16 = vpop.f32.mrf.mxu1  ;;  %v903_v14 = vmul.f32 %v902_v13, %v902_v13 }
  0xfa   : > { %1012 = vrot.lane.b32.xlu0 %v1010_v15, %s2160_s25  ;;  %v901_v16 = vsub.f32 %v2356_v5, %v2377_v9 }
  0xfb   : > { %v1896_v17 = vpop.f32.mrf.mxu1 }
  0xfe   : > { %1014 = vrot.lane.b32.xlu0 %v1010_v15, %s2161_s22 }
 0x16c   : > { %v1013_v18 = vpop.permute.xlu0 %1012 }
 0x16d   : > { %1063 = vrot.lane.b32.xlu1 %v1013_v18, %s2161_s22 }
 0x170   : > { %v1015_v19 = vpop.permute.xlu0 %1014 }
 0x171   : > { %v1021_v20 = vsel %vm1016_vm4, %v1015_v19, 0 }
 0x172   : > { %1898 = vmatpush3.bf16.xpose.msra.mxu1 %v1021_v20 }
 0x173   : > { %1903 = vmatprep.subr.bf16.mxu1 %v2158_v0 }
 0x179   : > { %1900 = vmatmul.mubr.msk.bf16.vlgmr.msra.gmra.mxu1 %vm1016_vm4, %v1010_v15 }
 0x17a   : > { %1905 = vmatprep.mubr.msk.bf16.mxu1 %vm2159_vm0, %v2158_v0 }
 0x1df   : > { %v1064_v21 = vpop.permute.xlu1 %1063 }
 0x1e0   : > { %v1069_v22 = vsel %vm1016_vm4, %v1064_v21, 0 }
 0x1e1   : > { %1904 = vmatpush3.bf16.xpose.msra.mxu1 %v1069_v22 }
 0x1e2   : > { %1915 = vmatprep.subr.bf16.mxu1 %v2158_v0 }
 0x1e8   : > { %1906 = vmatmul.mubr.msk.bf16.vlgmr.msra.gmra.mxu1 %vm1016_vm4, %v1013_v18 }
 0x1e9   : > { %1917 = vmatprep.mubr.msk.bf16.mxu1 %vm2159_vm0, %v2158_v0 }
 0x239   : > { %v1057_v23 = vpop.f32.mrf.mxu1 }
 0x23a   : > { %v1111_v25 = vmul.f32 0.25, %v1057_v23 }
 0x23b   : > { %v1901_v26 = vpop.f32.mrf.mxu1 }
 0x23c   : > { %v1114_v27 = vadd.f32 %v1113_v24, %v1111_v25 }
 0x23d   : > { %v1060_v28 = vpop.f32.mrf.mxu1 }
 0x23e   : > { %v1116_v29 = vsel %vm827_vm2, %v1114_v27, -inf }
 0x23f   : > { %1117 = vmax.xlane.f32.xlu0 %v1116_v29  ;;  %v1902_v30 = vpop.f32.mrf.mxu1 }
 0x2a8   : > { %v1105_v31 = vpop.f32.mrf.mxu1 }
 0x2a9   : > { %v1112_v32 = vmul.f32 0.25, %v1105_v31 }
 0x2aa   : > { %v1907_v33 = vpop.f32.mrf.mxu1 }
 0x2ab   : > { %v1115_v34 = vadd.f32 %v1113_v24, %v1112_v32 }
 0x2ac   : > { %v1108_v35 = vpop.f32.mrf.mxu1 }
 0x2ad   : > { %v1119_v36 = vsel %vm827_vm2, %v1115_v34, -inf }
 0x2ae   : > { %1120 = vmax.xlane.f32.xlu1 %v1119_v36  ;;  %v1908_v37 = vpop.f32.mrf.mxu1 }
 0x2bf   : > { %1189 = vrot.lane.b32.xlu1 %v1013_v18, %s2162_s27 }
 0x2c8   : > { %v1118_v38 = vpop.xlane.xlu0 %1117 }
 0x2c9   : > { %v1122_v39 = vsub.f32 %v1114_v27, %v1118_v38 }
 0x2cb   : > { %v1124_v42 = vmul.f32 1.442695, %v1122_v39 }
 0x337   : > { %v1121_v40 = vpop.xlane.xlu1 %1120 }
 0x338   : > { %v1123_v41 = vsub.f32 %v1115_v34, %v1121_v40 }
 0x33a   : > { %v1126_v43 = vmul.f32 1.442695, %v1123_v41  ;;  %v2038_v41 = vld [vmem:[%s799_s2 + $0x8] sm:$0xff]  }
 0x33b   : > { %v1190_v44 = vpop.permute.xlu1 %1189 }
 0x33c   : > { %2048 = vpow2.f32 %v1126_v43  ;;  %v1195_v45 = vsel %vm1145_vm5, %v1190_v44, 0 }
 0x33d   : > { %1916 = vmatpush3.bf16.msra.mxu1 %v1195_v45  ;;  %2050 = vpow2.f32 %v1124_v42 }
 0x33e   : > { %1929 = vmatprep.subr.bf16.mxu1 %v2158_v0 }
 0x349   : > { %v2049_v46 = vpop.eup %2048 }
 0x34a   : > { %v1131_v47 = vsel %vm827_vm2, %v2049_v46, 0.0  ;;  %v2051_v48 = vpop.eup %2050 }
 0x34b   : > { %1132 = vadd.xlane.f32.xlu0 %v1131_v47  ;;  %v1128_v49 = vsel %vm827_vm2, %v2051_v48, 0.0 }
 0x34f   : > { %1129 = vadd.xlane.f32.xlu0 %v1128_v49 }
 0x365   : > { %1140 = vrot.lane.b32.xlu0 %v1010_v15, %s2162_s27  ;;  %v907_v15 = vsub.s32 0, %v906_v12  ;;  %s788_s27 = scalar_lea.vmem %s2541_s9, %s2605_s30 }
 0x366   : > { %v1826_v28 = vld [vmem:[%s788_s27] ss:$0 sm:$0xff]  ;;  %s2583_s27 = sld [smem:[#allocation20_spill]] }
 0x367   : > { %v908_v17 = vrot.slane %v903_v14, %v907_v15 }
 0x369   : > { %v910_v18 = vmul.f32 %v908_v17, %v901_v16 }
 0x36b   : > { %v911_v19 = vadd.f32 %v910_v18, %v2377_v9 }
 0x36d   : > { %v912_v20 = vadd.f32 %v911_v19, %v2356_v5 }
 0x36f   : > { %v916_v21 = vsel %vm915_vm3, %v912_v20, 0.0 }
 0x3d4   : > { %v1133_v50 = vpop.xlane.xlu0 %1132 }
 0x3d5   : > { %2052 = vrcp.f32 %v1133_v50 }
 0x3d8   : > { %v1130_v51 = vpop.xlane.xlu0 %1129 }
 0x3d9   : > { %2054 = vrcp.f32 %v1130_v51  ;;  %v1830_v51 = vld [vmem:[%s791_s21] ss:$0 sm:$0xff]  ;;  %s802_s21 = scalar_lea.vmem %s2545_s13, %s2605_s30 }
 0x3dc   : > { %v1141_v52 = vpop.permute.xlu0 %1140 }
 0x3dd   : > { %v1147_v53 = vsel %vm1145_vm5, %v1141_v52, 0 }
 0x3de   : > { %1910 = vmatpush3.bf16.msra.mxu0 %v1147_v53  ;;  %v1816_v53 = vld [vmem:[%s772_s18] ss:$0 sm:$0xff]  ;;  %s810_s18 = scalar_lea.vmem %s2547_s15, %s2605_s30 }
 0x3df   : > { %1921 = vmatprep.subr.bf16.mxu0 %v2158_v0 }
 0x3e2   : > { %v2053_v54 = vpop.eup %2052 }
 0x3e3   : > { %v1137_v55 = vmul.f32 %v2053_v54, %v2049_v46 }
 0x3e5   : > { %v1139_v56 = vpack.c.bf16 %v1137_v55, %v1137_v55 }
 0x3e6   : > { %v2055_v57 = vpop.eup %2054 }
 0x3e7   : > { %1918 = vmatmul.mubr.msk.bf16.vlgmr.msra.gmra.mxu1 %vm827_vm2, %v1139_v56  ;;  %v1136_v58 = vmul.f32 %v2055_v57, %v2051_v48  ;;  %v1815_v48 = vld [vmem:[%s769_s19] ss:$0 sm:$0xff] }
 0x3e8   : > { %1933 = vmatprep.mubr.msk.bf16.mxu1 %vm2159_vm0, %v2158_v0  ;;  %1930 = vmatpush3.bf16.msra.mxu1 %v2038_v41  ;;  %v1831_v56 = vld [vmem:[%s794_s3] ss:$0 sm:$0xff]  ;;  %s1848_s3 = sshll.u32 %s2144_s0, 7 }
 0x3e9   : > { %v1138_v59 = vpack.c.bf16 %v1136_v58, %v1136_v58  ;;  %1931 = vmatprep.subr.bf16.mxu1 %v2158_v0  ;;  %s1580_s4 = scalar_lea.hbm %s2583_s27, %s1848_s3 }
 0x3eb   : > { %1912 = vmatmul.mubr.msk.bf16.vlgmr.msra.gmra.mxu0 %vm827_vm2, %v1138_v59 }
 0x3ec   : > { %1925 = vmatprep.mubr.msk.bf16.mxu0 %vm2159_vm0, %v2158_v0  ;;  %1922 = vmatpush3.bf16.msra.mxu0 %v2036_v60 }
 0x3ed   : > { %1923 = vmatprep.subr.bf16.mxu0 %v2158_v0 }
 0x3f0   : > { %1924 = vmatpush3.bf16.msra.mxu0 %v2037_v61 }
 0x3f1   : > { %1937 = vmatprep.subr.bf16.mxu0 %v2158_v0 }
 0x4a7   : > { %v1231_v62 = vpop.f32.mrf.mxu1 }
 0x4a8   : > { %v1855_v63 = vpack.c.bf16 %v1231_v62, %v1231_v62 }
 0x4a9   : > { %v1919_v1 = vpop.f32.mrf.mxu1 }
 0x4aa   : > { %1244 = vrot.lane.b32.xlu1 %v1855_v63, %s2163_s23  ;;  %s1854_s23 = sshll.u32 %s2605_s30, 6 }
 0x4ab   : > { %v1183_v2 = vpop.f32.mrf.mxu0  ;;  %v1234_v3 = vpop.f32.mrf.mxu1  ;;  %s807_s22 = scalar_lea.vmem %s2546_s14, %s1854_s23  ;;  %s813_s23 = scalar_lea.vmem %s2548_s16, %s2605_s30 }
 0x4ac   : > { %v1237_v4 = vpack.c.bf16 %v1183_v2, %v1183_v2  ;;  %v2040_v1 = vld [vmem:[%s807_s22 + $0x38] sm:$0xff]   ;;  %v2041_v2 = vld [vmem:[%s807_s22 + $0x30] sm:$0xff]   ;;  %v2042_v3 = vld [vmem:[%s807_s22 + $0x28] sm:$0xff]  }
 0x4ad   : > { %v1913_v6 = vpop.f32.mrf.mxu0  ;;  %v1920_v7 = vpop.f32.mrf.mxu1  ;;  %v2047_v10 = vld [vmem:[%s807_s22] sm:$0xff]  }
 0x4ae   : > { %1239 = vst.msk [vmem:[#allocation2] sm:$0xf] %vm1238_vm6, %v1237_v4  ;;  %v2043_v4 = vld [vmem:[%s807_s22 + $0x20] sm:$0xff]   ;;  %v2044_v6 = vld [vmem:[%s807_s22 + $0x18] sm:$0xff]   ;;  %v2045_v7 = vld [vmem:[%s807_s22 + $0x10] sm:$0xff]  }
 0x4af   : > { %v1186_v8 = vpop.f32.mrf.mxu0  ;;  %v1845_v41 = vld [vmem:[%s813_s23] ss:$0 sm:$0xff]  ;;  %s2064_s23 = scalar_lea.vmem %s1583_s26, 128 }
 0x4b0   : > { %v2046_v8 = vld [vmem:[%s807_s22 + $0x8] sm:$0xff]   ;;  %s816_s22 = scalar_lea.vmem %s2549_s17, %s2605_s30  ;;  %p2065_p1 = scmp.ne.s32.totalorder %s1583_s26, %s2064_s23 }
 0x4b1   : > { %v1914_v11 = vpop.f32.mrf.mxu0  ;;  %s2164_s30 = smov [#allocation3]  }
 0x4b2   : > { %v1832_v11 = vld [vmem:[%s802_s21] ss:$0 sm:$0xff]  ;;  %p2066_p2 = pnand %p2065_p1, %p2309_p3  ;;  %s2068_s25 = sshll.u32 %s2164_s30, 4  ;;  %s2069_s25 = int_to_ptr.vmem [resolvable:$false] %s2068_s25 }
 0x4b3   : > { %s2070_s0 = scalar_lea.vmem %s2069_s25, 256  ;;  %p2071_p5 = scmp.lt.s32.totalorder %s1583_s26, %s2069_s25 }
 0x4b4   : > { %p2067_p4 = pneg %p2066_p2  ;;  %p2072_p6 = scmp.lt.s32.totalorder %s2070_s0, %s2064_s23 }
 0x4b6   : > { %p2073_p7 = por %p2072_p6, %p2071_p5 }
 0x4b8   : > { %p2074_p8 = pnand %p2073_p7, %p2067_p4 }
 0x4ce   : > { %917 = vadd.xlane.f32.xlu1 %v916_v21 }
 0x51c   : > { %v1245_v22 = vpop.permute.xlu1 %1244 }
 0x51d   : > { %1248 = vst.msk [vmem:[#allocation2] sm:$0xf] %vm1247_vm7, %v1245_v22 }
 0x524   : > { %v1249_v23 = vld [vmem:[#allocation2] sm:$0xf] }
 0x525   : > { %1926 = vmatmul.mubr.msk.bf16.vlgmr.msra.gmra.mxu0 %vm915_vm3, %v1249_v23 }
 0x526   : > { %1953 = vmatprep.mubr.msk.bf16.mxu0 %vm2159_vm0, %v2158_v0  ;;  %1938 = vmatpush3.bf16.msra.mxu0 %v2040_v1 }
 0x527   : > { %1939 = vmatprep.subr.bf16.mxu0 %v2158_v0 }
 0x52a   : > { %1940 = vmatpush3.bf16.msra.mxu0 %v2041_v2 }
 0x52b   : > { %1941 = vmatprep.subr.bf16.mxu0 %v2158_v0 }
 0x52e   : > { %1942 = vmatpush3.bf16.msra.mxu0 %v2042_v3 }
 0x52f   : > { %1943 = vmatprep.subr.bf16.mxu0 %v2158_v0 }
 0x532   : > { %1944 = vmatpush3.bf16.msra.mxu0 %v2043_v4 }
 0x533   : > { %1945 = vmatprep.subr.bf16.mxu0 %v2158_v0 }
 0x536   : > { %1946 = vmatpush3.bf16.msra.mxu0 %v2044_v6 }
 0x537   : > { %1947 = vmatprep.subr.bf16.mxu0 %v2158_v0 }
 0x53a   : > { %1948 = vmatpush3.bf16.msra.mxu0 %v2045_v7 }
 0x53b   : > { %1949 = vmatprep.subr.bf16.mxu0 %v2158_v0 }
 0x53e   : > { %1950 = vmatpush3.bf16.msra.mxu0 %v2046_v8 }
 0x53f   : > { %1951 = vmatprep.subr.bf16.mxu0 %v2158_v0 }
 0x542   : > { %1952 = vmatpush3.bf16.msra.mxu0 %v2047_v10 }
 0x557   : > { %v918_v24 = vpop.xlane.xlu1 %917 }
 0x558   : > { %v920_v25 = vmul.f32 0.03125, %v918_v24 }
 0x55a   : > { %v921_v26 = vsub.f32 %v912_v20, %v920_v25 }
 0x55c   : > { %v922_v27 = vmul.f32 %v921_v26, %v921_v26  ;;  %v933_v50 = vmul.f32 %v1815_v48, %v921_v26  ;;  %v1836_v26 = vld [vmem:[%s810_s18] ss:$0 sm:$0xff]  ;;  %s2584_s18 = smov %s2583_s27 }
 0x55e   : > { %v923_v9 = vsel %vm915_vm3, %v922_v27, 0.0 }
 0x55f   : > { %924 = vadd.xlane.f32.xlu1 %v923_v9 }
 0x5e5   : > { %v1310_v29 = vpop.f32.mrf.mxu0 }
 0x5e6   : > { %v1311_v30 = vadd.f32 %v1826_v28, %v1310_v29 }
 0x5e7   : > { %v1927_v31 = vpop.f32.mrf.mxu0 }
 0x5e8   : > { %v1316_v32 = vadd.f32 %v1311_v30, %v2356_v5  ;;  %v2039_v5 = vld [vmem:[%s799_s2] sm:$0xff]   ;;  %v925_v42 = vpop.xlane.xlu1 %924  ;;  %s1569_s2 = scalar_lea.sflag [#allocation4], %s2585_s20 }
 0x5e9   : > { %v1313_v33 = vpop.f32.mrf.mxu0  ;;  %1932 = vmatpush3.bf16.msra.mxu1 %v2039_v5  ;;  %v926_v43 = vmul.f32 0.03125, %v925_v42 }
 0x5ea   : > { %v1319_v34 = vsel %vm915_vm3, %v1316_v32, 0.0 }
 0x5eb   : > { %1320 = vadd.xlane.f32.xlu0 %v1319_v34  ;;  %v1928_v35 = vpop.f32.mrf.mxu0  ;;  %v934_v44 = vadd.f32 1e-12, %v926_v43  ;;  %v1846_v43 = vld [vmem:[%s816_s22] ss:$0 sm:$0xff] }
 0x5ed   : > { %2056 = vrsqrt.f32 %v934_v44 }
 0x5fa   : > { %v2057_v49 = vpop.eup %2056 }
 0x5fb   : > { %v936_v52 = vmul.f32 %v2057_v49, %v933_v50 }
 0x5fd   : > { %v943_v58 = vadd.f32 %v1816_v53, %v936_v52 }
 0x5ff   : > { %v1346_v60 = vmul.f32 0.7, %v943_v58 }
 0x674   : > { %v1321_v36 = vpop.xlane.xlu0 %1320 }
 0x675   : > { %v1322_v37 = vmul.f32 0.03125, %v1321_v36 }
 0x677   : > { %v1323_v38 = vsub.f32 %v1316_v32, %v1322_v37 }
 0x679   : > { %v1324_v39 = vmul.f32 %v1323_v38, %v1323_v38  ;;  %v1335_v54 = vmul.f32 %v1830_v51, %v1323_v38 }
 0x67b   : > { %v1325_v40 = vsel %vm915_vm3, %v1324_v39, 0.0 }
 0x67c   : > { %1326 = vadd.xlane.f32.xlu0 %v1325_v40 }
 0x705   : > { %v1327_v45 = vpop.xlane.xlu0 %1326 }
 0x706   : > { %v1328_v46 = vmul.f32 0.03125, %v1327_v45 }
 0x708   : > { %v1336_v47 = vadd.f32 1e-12, %v1328_v46 }
 0x70a   : > { %2058 = vrsqrt.f32 %v1336_v47 }
 0x717   : > { %v2059_v55 = vpop.eup %2058 }
 0x718   : > { %v1338_v57 = vmul.f32 %v2059_v55, %v1335_v54 }
 0x71a   : > { %v1345_v59 = vadd.f32 %v1831_v56, %v1338_v57 }
 0x71c   : > { %v1347_v61 = vmul.f32 0.3, %v1345_v59 }
 0x71e   : > { %v1348_v62 = vadd.f32 %v1347_v61, %v1346_v60 }
 0x720   : > { %v1349_v63 = vpack.c.bf16 %v1348_v62, %v1348_v62 }
 0x722   : > { %1934 = vmatmul.mubr.msk.bf16.vlgmr.msra.gmra.mxu1 %vm915_vm3, %v1349_v63 }
 0x7e2   : > { %v1410_v12 = vpop.f32.mrf.mxu1 }
 0x7e3   : > { %v1411_v13 = vadd.f32 %v1832_v11, %v1410_v12 }
 0x7e4   : > { %v1935_v14 = vpop.f32.mrf.mxu1 }
 0x7e5   : > { %v1417_v15 = vmul.f32 0.044715, %v1411_v13  ;;  %v1416_v0 = vmul.f32 0.5, %v1411_v13 }
 0x7e6   : > { %v1413_v16 = vpop.f32.mrf.mxu1 }
 0x7e7   : > { %v1418_v17 = vmul.f32 %v1417_v15, %v1411_v13 }
 0x7e8   : > { %v1936_v18 = vpop.f32.mrf.mxu1 }
 0x7e9   : > { %v1419_v19 = vmul.f32 %v1418_v17, %v1411_v13 }
 0x7eb   : > { %v1420_v20 = vadd.f32 %v1419_v19, %v1411_v13 }
 0x7ed   : > { %v1421_v21 = vmul.f32 0.7978846, %v1420_v20 }
 0x7ef   : > { %2060 = vtanh.f32 %v1421_v21 }
 0x7fc   : > { %v2061_v22 = vpop.eup %2060 }
 0x7fd   : > { %v1423_v23 = vadd.f32 1.0, %v2061_v22 }
 0x7ff   : > { %v1424_v24 = vmul.f32 %v1423_v23, %v1416_v0 }
 0x801   : > { %v1425_v25 = vpack.c.bf16 %v1424_v24, %v1424_v24 }
 0x803   : > { %1954 = vmatmul.mubr.bf16.vlgmr.msra.gmra.mxu0 %v1425_v25 }
 0x8c3   : > { %v1531_v27 = vpop.f32.mrf.mxu0 }
 0x8c4   : > { %v1532_v9 = vadd.f32 %v1836_v26, %v1531_v27 }
 0x8c5   : > { %v1955_v28 = vpop.f32.mrf.mxu0 }
 0x8c6   : > { %v1537_v29 = vadd.f32 %v1532_v9, %v1348_v62 }
 0x8c7   : > { %v1534_v30 = vpop.f32.mrf.mxu0 }
 0x8c8   : > { %v1540_v31 = vsel %vm915_vm3, %v1537_v29, 0.0 }
 0x8c9   : > { %1541 = vadd.xlane.f32.xlu1 %v1540_v31  ;;  %v1956_v32 = vpop.f32.mrf.mxu0 }
 0x952   : > { %v1542_v33 = vpop.xlane.xlu1 %1541 }
 0x953   : > { %v1543_v34 = vmul.f32 0.03125, %v1542_v33 }
 0x955   : > { %v1544_v35 = vsub.f32 %v1537_v29, %v1543_v34 }
 0x957   : > { %v1545_v36 = vmul.f32 %v1544_v35, %v1544_v35  ;;  %v1556_v5 = vmul.f32 %v1845_v41, %v1544_v35 }
 0x959   : > { %v1546_v37 = vsel %vm915_vm3, %v1545_v36, 0.0 }
 0x95a   : > { %1547 = vadd.xlane.f32.xlu0 %v1546_v37 }
 0x9e3   : > { %v1548_v38 = vpop.xlane.xlu0 %1547 }
 0x9e4   : > { %v1549_v39 = vmul.f32 0.03125, %v1548_v38 }
 0x9e6   : > { %v1557_v40 = vadd.f32 1e-12, %v1549_v39 }
 0x9e8   : > { %2062 = vrsqrt.f32 %v1557_v40 }
 0x9f5   : > { %v2063_v42 = vpop.eup %2062 }
 0x9f6   : > { %v1559_v44 = vmul.f32 %v2063_v42, %v1556_v5 }
 0x9f8   : > { %v1566_v45 = vadd.f32 %v1846_v43, %v1559_v44 }
 0x9fa   : > { %1567 = vst.msk [vmem:[%s2342_s1] sm:$0xff] %vm915_vm3, %v1566_v45 }
 0x9fb   : > { %2077 = shalt.err (!%p2074_p8)
}
 0x9fc   : > { %s2078_s19 = scalar_lea.hbm %s1580_s4, 128  ;;  %s2082_s3 = scalar_lea.hbm %s2584_s18, 256 }
 0x9fd   : > { %p2079_p10 = scmp.ne.s32.totalorder %s1580_s4, %s2078_s19  ;;  %p2083_p13 = scmp.lt.s32.totalorder %s1580_s4, %s2584_s18 }
 0x9fe   : > { %p2084_p0 = scmp.lt.s32.totalorder %s2082_s3, %s2078_s19 }
 0x9ff   : > { %p2080_p11 = pnand %p2079_p10, %p2309_p3 }
 0xa00   : > { %p2085_p1 = por %p2084_p0, %p2083_p13 }
 0xa01   : > { %p2081_p12 = pneg %p2080_p11 }
 0xa03   : > { %p2086_p2 = pnand %p2085_p1, %p2081_p12 }
 0xa05   : > { %2089 = shalt.err (!%p2086_p2)
}
 0xa06   : > { %1957 = dma.vmem_to_hbm [thread:$0]  (%p2309_p3), %s1583_s26, 128, %s1580_s4, %s1569_s2  }
 0xa07 PF: > { %s2586_s27 = sld [smem:[#allocation10_spill]] }
 0xa08   : > { %s2587_s20 = sld [smem:[#allocation6_spill]] }
 0xa0d   : > { %p1963_p4 = scmp.ge.s32.totalorder %s2586_s27, 2 }
 0xa0e   : > { %s1594_s30 = sand.u32 1, %s2587_s20  }
 0xa0f   : > { %p1960_p5 = pnand %p1963_p4, %p2319_p9  ;;  %s1595_s25 = scalar_lea.sflag [#allocation4], %s1594_s30 }
 0xa11   : > { %p1961_p6 = pneg %p1960_p5 }
 0xa13   : > { %2123 = dma.done.wait (%p1961_p6), %s1595_s25, 128  }
 0xa14   : > { %2125 = vsyncadd (%p1961_p6), %s1595_s25, 4294967168  ;;  %s31_s20 = sadd.s32 1, %s2586_s27   ;;  %s2589_s0 = sld [smem:[#allocation7_spill]] }
 0xa15   : > { %p28_p7 = scmp.ge.s32.totalorder %s31_s20, 6   ;;  %s2590_s29 = sld [smem:[#allocation14_spill]] }
 0xa16   : > { %s2591_s30 = sld [smem:[#allocation8_spill]]  ;;  %s2595_s27 = smov %s2132_s28 }
 0xa17   : > { %s2592_s4 = sld [smem:[#allocation9_spill]] }
 0xa18   : > { %s2593_s19 = sld [smem:[#allocation11_spill]] }
 0xa19   : > { %s2594_s1 = sld [smem:[#allocation12_spill]]  ;;  %30 = sbr.rel (!%p28_p7) target bundleno = 12 (0xc), region = 172 }
 0xa1a   : > { %s2596_s28 = smov %s2589_s0 }
 0xa1d   : > { %s2597_s0 = smov %s2592_s4 }
 0xa1e   :  { %1600 = vsyncpa [#allocation4], 1 }
 0xa1f   :  { %1602 = vsyncpa [#allocation4 + $0x1], 1 }

</bundles_post_ra>
